<compile_context>
chip_gen: v6e
topology: v6e:2x2x1
jax: 0.10.0
libtpu: 0.0.40
codegen_flags: <defaults>
</compile_context>

<pallas_src>
import jax
import jax.numpy as jnp
from jax import lax
from jax.experimental import pallas as pl
from jax.experimental.pallas import tpu as pltpu

_MIB = 1024 * 1024


def _round_up(x: int, m: int) -> int:
    return (x + m - 1) // m * m


def _vmem_budget():
    """(tile budget bytes, vmem_limit_bytes) sized from physical VMEM."""
    try:
        info = pltpu.get_tpu_info()
        phys = int(getattr(info, "vmem_capacity_bytes", 0)) or 64 * _MIB
    except Exception:  # pragma: no cover - be conservative if the query fails
        phys = 64 * _MIB                      # v7x per-core VMEM
    budget = min(56 * _MIB, phys // 2)        # 32 MiB on v7x, 56 MiB on v5e/v6e
    limit = min(phys - phys // 8, budget + 16 * _MIB)
    return budget, int(limit)


def _choose_row_tile(n_rows: int, cap_rows: int, max_rows: int) -> int:
    tm = min(int(max_rows), int(cap_rows))
    # Keep at least 2 grid steps so the "parallel" axis gives v7x's second
    # TensorCore work (irrelevant but harmless on 1-TC v5e/v6e).
    tm = min(tm, _round_up(pl.cdiv(n_rows, 2), 8))
    tm = max(8, (tm // 8) * 8)
    if tm >= n_rows:
        tm = n_rows                           # full-extent block (always legal)
    return tm


# ---------------------------------------------------------------------------
# Path 1: resident weight (fits VMEM) — one grid axis over row tiles.
# ---------------------------------------------------------------------------
def _generator_kernel(x_ref, w_ref, b_ref, o_ref):
    """x_ref: (tm, D) f32 | w_ref: (D, V) bf16 resident | b_ref: (1, V) f32
    o_ref: (tm, V) log-probabilities."""
    x_bf = x_ref[...].astype(jnp.bfloat16)
    logits = jnp.dot(x_bf, w_ref[...], preferred_element_type=jnp.float32)
    logits = logits + b_ref[...]                          # f32 broadcast (1, V)

    # Numerically stable log_softmax along the vocab (lane) axis, all in f32.
    m = jnp.max(logits, axis=-1, keepdims=True)
    shifted = logits - m
    lse = jnp.log(jnp.sum(jnp.exp(shifted), axis=-1, keepdims=True))
    o_ref[...] = (shifted - lse).astype(o_ref.dtype)


# ---------------------------------------------------------------------------
# Path 2: vocab-tiled two-pass online logsumexp (weight does not fit VMEM).
# grid = (row tiles, pass in {0: lse, 1: write}, vocab tiles)
# ---------------------------------------------------------------------------
def _make_vocab_tiled_kernel(tv: int, vocab: int, needs_mask: bool):
    def kernel(x_ref, w_ref, b_ref, o_ref, m_sc, l_sc):
        p = pl.program_id(1)
        j = pl.program_id(2)

        @pl.when(jnp.logical_and(p == 0, j == 0))
        def _():
            m_sc[...] = jnp.full_like(m_sc, -jnp.inf)
            l_sc[...] = jnp.zeros_like(l_sc)

        x_bf = x_ref[...].astype(jnp.bfloat16)
        logits = jnp.dot(x_bf, w_ref[...], preferred_element_type=jnp.float32)
        logits = logits + b_ref[...]
        if needs_mask:  # ragged last vocab tile: keep padded lanes out of lse
            col = j * tv + lax.broadcasted_iota(jnp.int32, logits.shape, 1)
            logits = jnp.where(col < vocab, logits, -jnp.inf)

        @pl.when(p == 0)
        def _():  # accumulate running max / sum(exp)
            m_prev = m_sc[...]
            m_new = jnp.maximum(m_prev, jnp.max(logits, axis=-1, keepdims=True))
            l_sc[...] = (l_sc[...] * jnp.exp(m_prev - m_new)
                         + jnp.sum(jnp.exp(logits - m_new), axis=-1, keepdims=True))
            m_sc[...] = m_new

        @pl.when(p == 1)
        def _():  # recompute logits tile, subtract final lse, write out
            lse = m_sc[...] + jnp.log(l_sc[...])
            o_ref[...] = (logits - lse).astype(o_ref.dtype)

    return kernel


def generator_forward(x: jnp.ndarray,
                      weight: jnp.ndarray,
                      bias: jnp.ndarray,
                      *,
                      out_dtype=None,
                      max_block_rows: int = 512,
                      vocab_block: int | None = None,
                      force_vocab_tiled: bool = False) -> jnp.ndarray:
    """log_softmax(x @ weight.T + bias, axis=-1).

    x      : (..., d_model) float32
    weight : (vocab_size, d_model)  -- torch nn.Linear layout
    bias   : (vocab_size,)
    """
    *lead, d_model = x.shape
    vocab = weight.shape[0]
    out_dtype = x.dtype if out_dtype is None else jnp.dtype(out_dtype)
    out_bytes = jnp.dtype(out_dtype).itemsize

    # Layout plumbing outside the kernel: lane-dense contraction output,
    # bf16 weight (halves HBM traffic + VMEM), f32 bias.
    w = weight.T.astype(jnp.bfloat16)          # (D, V)
    b = bias.reshape(1, vocab).astype(jnp.float32)

    x2 = x.reshape(-1, d_model)
    M = x2.shape[0]

    budget, vmem_limit = _vmem_budget()

    # Per-row VMEM cost: double-buffered x + out tiles, bf16 cast of x, and the
    # f32 logits / exp / shifted temporaries materialized by log-softmax.
    per_row = (2 * 4 * d_model + 2 * d_model
               + 2 * out_bytes * vocab + 3 * 4 * vocab)
    # Resident weight + bias, counted twice (safe even if single-buffering is
    # unavailable and the runtime double-buffers them).
    resident = 2 * (2 * d_model * vocab + 4 * vocab)
    rows_cap = (budget - resident) // per_row if budget > resident else 0

    use_resident = (not force_vocab_tiled) and rows_cap >= 8

    if use_resident:
        tm = _choose_row_tile(M, rows_cap, max_block_rows)
        n_row_tiles = pl.cdiv(M, tm)
        cost = pl.CostEstimate(
            flops=2 * M * d_model * vocab + 5 * M * vocab,
            transcendentals=M * vocab + M,
            bytes_accessed=(4 * M * d_model + 2 * d_model * vocab + 4 * vocab
                            + out_bytes * M * vocab),
        )

        def build(single_buffer_weights: bool):
            if single_buffer_weights:
                w_spec = pl.BlockSpec((d_model, vocab), lambda i: (0, 0),
                                      pipeline_mode=pl.Buffered(1))
                b_spec = pl.BlockSpec((1, vocab), lambda i: (0, 0),
                                      pipeline_mode=pl.Buffered(1))
            else:
                w_spec = pl.BlockSpec((d_model, vocab), lambda i: (0, 0))
                b_spec = pl.BlockSpec((1, vocab), lambda i: (0, 0))
            return pl.pallas_call(
                _generator_kernel,
                out_shape=jax.ShapeDtypeStruct((M, vocab), out_dtype),
                grid_spec=pltpu.PrefetchScalarGridSpec(
                    num_scalar_prefetch=0,
                    grid=(n_row_tiles,),
                    in_specs=[pl.BlockSpec((tm, d_model), lambda i: (i, 0)),
                              w_spec, b_spec],
                    out_specs=pl.BlockSpec((tm, vocab), lambda i: (i, 0)),
                ),
                compiler_params=pltpu.CompilerParams(
                    dimension_semantics=("parallel",),
                    vmem_limit_bytes=vmem_limit,
                ),
                cost_estimate=cost,
            )

        try:
            out = build(True)(x2, w, b)
        except Exception:   # pragma: no cover - JAX without Buffered(1) support
            out = build(False)(x2, w, b)
        return out.reshape(*lead, vocab)

    # ---- vocab-tiled fallback (weight too large to be VMEM-resident) --------
    tv = vocab if vocab_block is None else int(vocab_block)
    tv = min(tv, vocab, 2048)
    if vocab >= 128:
        tv = max(128, (tv // 128) * 128)
    needs_mask = (vocab % tv) != 0
    n_vocab_tiles = pl.cdiv(vocab, tv)

    w_tile_bytes = 2 * (2 * d_model * tv + 4 * tv)       # dbl-buffered bf16 W + f32 b
    per_row_t = (2 * 4 * d_model + 2 * d_model
                 + 2 * out_bytes * tv + 3 * 4 * tv + 2 * 4)
    rows_cap_t = max(8, (budget - w_tile_bytes) // per_row_t) \
        if budget > w_tile_bytes else 8
    tm = _choose_row_tile(M, rows_cap_t, max_block_rows)
    n_row_tiles = pl.cdiv(M, tm)

    cost = pl.CostEstimate(
        flops=2 * (2 * M * d_model * vocab) + 6 * M * vocab,
        transcendentals=M * vocab + M * n_vocab_tiles,
        bytes_accessed=(4 * M * d_model
                        + 2 * n_row_tiles * (2 * d_model * vocab + 4 * vocab)
                        + out_bytes * M * vocab),
    )

    out = pl.pallas_call(
        _make_vocab_tiled_kernel(tv, vocab, needs_mask),
        out_shape=jax.ShapeDtypeStruct((M, vocab), out_dtype),
        grid_spec=pltpu.PrefetchScalarGridSpec(
            num_scalar_prefetch=0,
            grid=(n_row_tiles, 2, n_vocab_tiles),
            in_specs=[
                pl.BlockSpec((tm, d_model), lambda i, p, j: (i, 0)),
                pl.BlockSpec((d_model, tv), lambda i, p, j: (0, j)),
                pl.BlockSpec((1, tv), lambda i, p, j: (0, j)),
            ],
            # During the lse pass (p==0) the output block index is pinned to
            # (i, 0) and never written back; pass 1 streams the real tiles.
            out_specs=pl.BlockSpec((tm, tv), lambda i, p, j: (i, p * j)),
            scratch_shapes=[pltpu.VMEM((tm, 1), jnp.float32),   # running max
                            pltpu.VMEM((tm, 1), jnp.float32)],  # running sum
        ),
        compiler_params=pltpu.CompilerParams(
            dimension_semantics=("parallel", "arbitrary", "arbitrary"),
            vmem_limit_bytes=vmem_limit,
        ),
        cost_estimate=cost,
    )(x2, w, b)
    return out.reshape(*lead, vocab)


if __name__ == "__main__":
    # Small deterministic config consistent with the module.
    batch, seq_len, d_model, vocab_size = 2, 8, 32, 128

    key = jax.random.PRNGKey(0)
    kx, kw, kb = jax.random.split(key, 3)
    x = jax.random.normal(kx, (batch, seq_len, d_model), dtype=jnp.float32)
    weight = jax.random.normal(kw, (vocab_size, d_model), dtype=jnp.float32) / jnp.sqrt(d_model)
    bias = jax.random.normal(kb, (vocab_size,), dtype=jnp.float32) * 0.01

    out = jax.block_until_ready(generator_forward(x, weight, bias))
    assert out.shape == (batch, seq_len, vocab_size)
    assert out.dtype == jnp.float32

    # Reference: log_softmax(x @ W^T + b, axis=-1). bf16 matmul inputs with f32
    # accumulation -> loosened tolerance vs the pure-f32 reference.
    ref = jax.nn.log_softmax(x @ weight.T + bias, axis=-1)
    max_err = float(jnp.max(jnp.abs(out - ref)))
    assert jnp.allclose(out, ref, atol=5e-2, rtol=5e-2), f"max_err={max_err}"
    # Log-probabilities must normalize.
    assert jnp.allclose(jnp.sum(jnp.exp(out), axis=-1), 1.0, atol=1e-3)

    # Exercise the vocab-tiled online-logsumexp fallback (large-vocab path).
    vocab_big = 512
    kw2, kb2 = jax.random.split(kb)
    weight2 = jax.random.normal(kw2, (vocab_big, d_model), dtype=jnp.float32) / jnp.sqrt(d_model)
    bias2 = jax.random.normal(kb2, (vocab_big,), dtype=jnp.float32) * 0.01
    out2 = jax.block_until_ready(
        generator_forward(x, weight2, bias2, force_vocab_tiled=True, vocab_block=128))
    ref2 = jax.nn.log_softmax(x @ weight2.T + bias2, axis=-1)
    max_err2 = float(jnp.max(jnp.abs(out2 - ref2)))
    assert out2.shape == (batch, seq_len, vocab_big)
    assert jnp.allclose(out2, ref2, atol=5e-2, rtol=5e-2), f"max_err={max_err2}"
    assert jnp.allclose(jnp.sum(jnp.exp(out2), axis=-1), 1.0, atol=1e-3)

    # TODO(synk): a fused NLL variant (gather target logit, emit (M,1) losses)
    # would remove the (M,V) output write entirely for training-loss callers.
    print("KERNEL_OK")
</pallas_src>

<mosaic_0001>
module attributes {stable_mosaic.version = 11 : i64} {
  func.func @_generator_kernel(%arg0: i32, %arg1: memref<8x32xf32, #tpu.memory_space<vmem>>, %arg2: memref<32x128xbf16, #tpu.memory_space<vmem>>, %arg3: memref<1x128xf32, #tpu.memory_space<vmem>>, %arg4: memref<8x128xf32, #tpu.memory_space<vmem>>) attributes {dimension_semantics = [#tpu.dimension_semantics<parallel>], iteration_bounds = array<i64: 2>, scalar_prefetch = 0 : i64, scratch_operands = 0 : i64, tpu.core_type = #tpu.core_type<tc>, window_params = [{transform_indices = @transform_0, window_bounds = array<i64: 8, 32>}, {pipeline_mode = #tpu.pipeline_mode<synchronous>, transform_indices = @transform_1, window_bounds = array<i64: 32, 128>}, {pipeline_mode = #tpu.pipeline_mode<synchronous>, transform_indices = @transform_2, window_bounds = array<i64: 1, 128>}, {transform_indices = @transform_3, window_bounds = array<i64: 8, 128>}]} {
    %c0 = arith.constant 0 : index
    %c0_0 = arith.constant 0 : index
    %0 = vector.load %arg1[%c0, %c0_0] : memref<8x32xf32, #tpu.memory_space<vmem>>, vector<8x32xf32>
    %1 = arith.truncf %0 : vector<8x32xf32> to vector<8x32xbf16>
    %c0_1 = arith.constant 0 : index
    %c0_2 = arith.constant 0 : index
    %2 = vector.load %arg2[%c0_1, %c0_2] : memref<32x128xbf16, #tpu.memory_space<vmem>>, vector<32x128xbf16>
    %cst = arith.constant dense<0.000000e+00> : vector<8x128xf32>
    %3 = tpu.matmul %1, %2, %cst {dimension_numbers = #tpu.dot_dimension_numbers<[1], [0], [0], [1], [0, 0, 1, 1], [], []>} : vector<8x32xbf16>, vector<32x128xbf16>, vector<8x128xf32> -> vector<8x128xf32>
    %c0_3 = arith.constant 0 : index
    %c0_4 = arith.constant 0 : index
    %4 = vector.load %arg3[%c0_3, %c0_4] : memref<1x128xf32, #tpu.memory_space<vmem>>, vector<1x128xf32>
    %5 = vector.broadcast %4 : vector<1x128xf32> to vector<8x128xf32>
    %6 = arith.addf %3, %5 : vector<8x128xf32>
    %cst_5 = arith.constant dense<0xFF800000> : vector<8xf32>
    %7 = vector.multi_reduction <maximumf>, %6, %cst_5 [1] : vector<8x128xf32> to vector<8xf32>
    %8 = vector.shape_cast %7 : vector<8xf32> to vector<8x1xf32>
    %9 = vector.broadcast %8 : vector<8x1xf32> to vector<8x128xf32>
    %10 = arith.subf %6, %9 : vector<8x128xf32>
    %11 = math.exp %10 : vector<8x128xf32>
    %cst_6 = arith.constant dense<0.000000e+00> : vector<8xf32>
    %12 = vector.multi_reduction <add>, %11, %cst_6 [1] : vector<8x128xf32> to vector<8xf32>
    %13 = vector.shape_cast %12 : vector<8xf32> to vector<8x1xf32>
    %14 = math.log %13 : vector<8x1xf32>
    %15 = vector.broadcast %14 : vector<8x1xf32> to vector<8x128xf32>
    %16 = arith.subf %10, %15 : vector<8x128xf32>
    %c0_7 = arith.constant 0 : index
    %c0_8 = arith.constant 0 : index
    %17 = vector.load %arg4[%c0_7, %c0_8] : memref<8x128xf32, #tpu.memory_space<vmem>>, vector<8x128xf32>
    tpu.vector_store %arg4[%c0_7, %c0_8], %16 {strides = array<i32>} : memref<8x128xf32, #tpu.memory_space<vmem>>, vector<8x128xf32>,
    return
  }
  func.func @transform_0(%arg0: i32) -> (i32, i32) {
    %c0_i32 = arith.constant 0 : i32
    %c0_i32_0 = arith.constant 0 : i32
    return %arg0, %c0_i32 : i32, i32
  }
  func.func @transform_1(%arg0: i32) -> (i32, i32) {
    %c0_i32 = arith.constant 0 : i32
    %c0_i32_0 = arith.constant 0 : i32
    %c0_i32_1 = arith.constant 0 : i32
    return %c0_i32, %c0_i32_0 : i32, i32
  }
  func.func @transform_2(%arg0: i32) -> (i32, i32) {
    %c0_i32 = arith.constant 0 : i32
    %c0_i32_0 = arith.constant 0 : i32
    %c0_i32_1 = arith.constant 0 : i32
    return %c0_i32, %c0_i32_0 : i32, i32
  }
  func.func @transform_3(%arg0: i32) -> (i32, i32) {
    %c0_i32 = arith.constant 0 : i32
    %c0_i32_0 = arith.constant 0 : i32
    return %arg0, %c0_i32 : i32, i32
  }
}

module attributes {stable_mosaic.version = 11 : i64} {
  func.func @_generator_kernel(%arg0: i32, %arg1: memref<8x32xf32, #tpu.memory_space<vmem>>, %arg2: memref<32x128xbf16, #tpu.memory_space<vmem>>, %arg3: memref<1x128xf32, #tpu.memory_space<vmem>>, %arg4: memref<8x128xf32, #tpu.memory_space<vmem>>) attributes {dimension_semantics = [#tpu.dimension_semantics<parallel>], iteration_bounds = array<i64: 2>, scalar_prefetch = 0 : i64, scratch_operands = 0 : i64, tpu.core_type = #tpu.core_type<tc>, window_params = [{transform_indices = @transform_0, window_bounds = array<i64: 8, 32>}, {pipeline_mode = #tpu.pipeline_mode<synchronous>, transform_indices = @transform_1, window_bounds = array<i64: 32, 128>}, {pipeline_mode = #tpu.pipeline_mode<synchronous>, transform_indices = @transform_2, window_bounds = array<i64: 1, 128>}, {transform_indices = @transform_3, window_bounds = array<i64: 8, 128>}]} {
    %c0 = arith.constant 0 : index
    %c0_0 = arith.constant 0 : index
    %0 = vector.load %arg1[%c0, %c0_0] : memref<8x32xf32, #tpu.memory_space<vmem>>, vector<8x32xf32>
    %1 = arith.truncf %0 : vector<8x32xf32> to vector<8x32xbf16>
    %c0_1 = arith.constant 0 : index
    %c0_2 = arith.constant 0 : index
    %2 = vector.load %arg2[%c0_1, %c0_2] : memref<32x128xbf16, #tpu.memory_space<vmem>>, vector<32x128xbf16>
    %cst = arith.constant dense<0.000000e+00> : vector<8x128xf32>
    %3 = tpu.matmul %1, %2, %cst {dimension_numbers = #tpu.dot_dimension_numbers<[1], [0], [0], [1], [0, 0, 1, 1], [], []>} : vector<8x32xbf16>, vector<32x128xbf16>, vector<8x128xf32> -> vector<8x128xf32>
    %c0_3 = arith.constant 0 : index
    %c0_4 = arith.constant 0 : index
    %4 = vector.load %arg3[%c0_3, %c0_4] : memref<1x128xf32, #tpu.memory_space<vmem>>, vector<1x128xf32>
    %5 = vector.broadcast %4 : vector<1x128xf32> to vector<8x128xf32>
    %6 = arith.addf %3, %5 : vector<8x128xf32>
    %cst_5 = arith.constant dense<0xFF800000> : vector<8xf32>
    %7 = vector.multi_reduction <maximumf>, %6, %cst_5 [1] : vector<8x128xf32> to vector<8xf32>
    %8 = vector.shape_cast %7 : vector<8xf32> to vector<8x1xf32>
    %9 = vector.broadcast %8 : vector<8x1xf32> to vector<8x128xf32>
    %10 = arith.subf %6, %9 : vector<8x128xf32>
    %11 = math.exp %10 : vector<8x128xf32>
    %cst_6 = arith.constant dense<0.000000e+00> : vector<8xf32>
    %12 = vector.multi_reduction <add>, %11, %cst_6 [1] : vector<8x128xf32> to vector<8xf32>
    %13 = vector.shape_cast %12 : vector<8xf32> to vector<8x1xf32>
    %14 = math.log %13 : vector<8x1xf32>
    %15 = vector.broadcast %14 : vector<8x1xf32> to vector<8x128xf32>
    %16 = arith.subf %10, %15 : vector<8x128xf32>
    %c0_7 = arith.constant 0 : index
    %c0_8 = arith.constant 0 : index
    %17 = vector.load %arg4[%c0_7, %c0_8] : memref<8x128xf32, #tpu.memory_space<vmem>>, vector<8x128xf32>
    tpu.vector_store %arg4[%c0_7, %c0_8], %16 {strides = array<i32>} : memref<8x128xf32, #tpu.memory_space<vmem>>, vector<8x128xf32>,
    return
  }
  func.func @transform_0(%arg0: i32) -> (i32, i32) {
    %c0_i32 = arith.constant 0 : i32
    %c0_i32_0 = arith.constant 0 : i32
    return %arg0, %c0_i32 : i32, i32
  }
  func.func @transform_1(%arg0: i32) -> (i32, i32) {
    %c0_i32 = arith.constant 0 : i32
    %c0_i32_0 = arith.constant 0 : i32
    %c0_i32_1 = arith.constant 0 : i32
    return %c0_i32, %c0_i32_0 : i32, i32
  }
  func.func @transform_2(%arg0: i32) -> (i32, i32) {
    %c0_i32 = arith.constant 0 : i32
    %c0_i32_0 = arith.constant 0 : i32
    %c0_i32_1 = arith.constant 0 : i32
    return %c0_i32, %c0_i32_0 : i32, i32
  }
  func.func @transform_3(%arg0: i32) -> (i32, i32) {
    %c0_i32 = arith.constant 0 : i32
    %c0_i32_0 = arith.constant 0 : i32
    return %arg0, %c0_i32 : i32, i32
  }
}

</mosaic_0001>

<bundles_post_ra>
// kernel: tpu_custom_call.1
= control target key start
LH: loop header
LB: loop body
LE: loop exit
PB: predicated region body
PF: predicated region fallthrough
CT: control target
= control target key end

     0   :  { %8 = vsyncpa [#allocation3], 0  ;;  %s784_s0 = inlined_call_operand.hbm [shape: f32[16,32], index: 0, kind: input, shape index: {}]   ;;  %s785_s1 = inlined_call_operand.hbm [shape: bf16[32,128], index: 1, kind: input, shape index: {}]   ;;  %s786_s2 = inlined_call_operand.vmem [shape: f32[1,128], index: 2, kind: input, shape index: {}]   ;;  %s787_s3 = inlined_call_operand.hbm [shape: f32[16,128], index: 3, kind: output, shape index: {}]  }
   0x1   :  { %10 = vsyncpa [#allocation3 + $0x1], 0 }
   0x2   :  { %11 = vsyncpa [#allocation6], 0 }
   0x3   :  { %12 = vsyncpa [#allocation4], 0 }
   0x4   :  { %14 = vsyncpa [#allocation4 + $0x1], 0  ;;  %s623_s12 = smov 0   ;;  %s625_s13 = smov 0  }
   0x5   :  { %s627_s14 = smov 0   ;;  %s629_s15 = smov 0  }
   0x6 LB: > { %s644_s16 = sadd.s32 4294967295, %s594_s15   ;;  %s376_s17 = sadd.s32 4294967294, %s594_s15   ;;  %s594_s15 = sphi %s629_s15, %s809_s15   ;;  %s590_s14 = sphi %s627_s14, %s808_s14   ;;  %s586_s13 = sphi %s625_s13, %s807_s13   ;;  %s582_s12 = sphi %s623_s12, %s806_s12  }
   0x7   : > { %p40_p0 = scmp.ne.s32.totalorder %s586_s13, %s582_s12  ;;  %p788_p1 = scmp.eq.s32.totalorder %s644_s16, 0 }
   0x8   : > { %p112_p3 = scmp.eq.s32.totalorder %s376_s17, 1  ;;  %p377_p5 = scmp.ge.s32.totalorder %s594_s15, 1 }
   0x9   : > { %p653_p4 = por %p788_p1, %p40_p0  ;;  %p119_p7 = scmp.lt.s32.totalorder %s594_s15, 3 }
   0xa   : > { %p658_p6 = por %p112_p3, %p40_p0  ;;  %s596_s21 = smov [#allocation5]  }
   0xb   : > { %s792_s18 = scalar_select %p653_p4, 1, 0 }
   0xc   : > { %s793_s19 = scalar_select %p658_p6, 1, 0 }
   0xd   : > { %p663_p8 = pnand %p377_p5, %p119_p7  ;;  %s131_s22 = sshll.u32 %s596_s21, 4  ;;  %s132_s22 = int_to_ptr.vmem [resolvable:$true] %s131_s22 }
   0xe   : > { %s677_s24 = sadd.s32 1, %s594_s15   ;;  %s27_s25 = sadd.s32 1, %s590_s14 }
   0xf   : > { %s794_s20 = scalar_select %p663_p8, 1, 0 }
  0x10   : > { %p413_p9 = pneg %p663_p8  ;;  %s24_s26 = ssub.s32 %s594_s15, %s677_s24 }
  0x11   : > { %s483_s27 = scalar_lea.vmem %s132_s22, 256  ;;  %p491_p5 = scmp.lt.s32.totalorder %s132_s22, %s132_s22 }
  0x12   : > { %p672_p11 = pnand %p413_p9, %p788_p1  ;;  %p484_p13 = scmp.ne.s32.totalorder %s132_s22, %s483_s27 }
  0x13   : > { %p492_p7 = scmp.lt.s32.totalorder %s483_s27, %s483_s27 }
  0x14   : > { %p474_p12 = pneg %p672_p11 }
  0x15   : > { %p493_p10 = por %p492_p7, %p491_p5 }
  0x16   : > { %p486_p0 = pnand %p484_p13, %p474_p12 }
  0x18   : > { %p487_p3 = pneg %p486_p0 }
  0x1a   : > { %p494_p2 = pnand %p493_p10, %p487_p3 }
  0x1c   : > { %497 = shalt.err (!%p494_p2)
}
  0x1d   : > { %s597_s28 = smov 64   ;;  %s598_s29 = smov 4  }
  0x1e   : > { %416 = dma.hbm_to_vmem [thread:$0]  (!%p672_p11), %s785_s1, 256, %s132_s22, [#allocation6], %s597_s28, %s597_s28, %s598_s29  }
  0x1f   : > { %p25_p9 = scmp.eq.s32.totalorder %s24_s26, 0  ;;  %p34_p12 = scmp.ne.s32.totalorder %s590_s14, %s586_s13 }
  0x20   : > { %p35_p10 = scmp.eq.s32.totalorder %s594_s15, 0  ;;  %p426_p2 = scmp.lt.s32.totalorder %s594_s15, 2 }
  0x21   : > { %s694_s5 = scalar_select %p25_p9, %s590_s14, %s27_s25  }
  0x22   : > { %p36_p13 = por %p35_p10, %p34_p12  ;;  %p796_p0 = scmp.eq.s32.totalorder %s644_s16, 1 }
  0x23   : > { %s148_s7 = sand.u32 1, %s590_s14   ;;  %s381_s8 = sshll.u32 %s594_s15, 7 }
  0x24   : > { %p698_p3 = por %p796_p0, %p34_p12  ;;  %s380_s9 = sshll.u32 %s148_s7, 3 }
  0x25   : > { %s707_s17 = scalar_lea.hbm %s784_s0, %s381_s8  ;;  %s152_s21 = scalar_lea.vmem [#allocation2], %s380_s9 }
  0x26   : > { %s797_s6 = scalar_select %p698_p3, 1, 0 }
  0x27   : > { %s159_s22 = sshll.u32 %s152_s21, 4  ;;  %p709_p11 = pnand %p426_p2, %p36_p13  ;;  %s160_s22 = int_to_ptr.vmem [resolvable:$true] %s159_s22 }
  0x28   : > { %s149_s25 = scalar_lea.sflag [#allocation3], %s148_s7  ;;  %s498_s26 = scalar_lea.hbm %s707_s17, 128 }
  0x29   : > { %p499_p5 = scmp.ne.s32.totalorder %s707_s17, %s498_s26  ;;  %p500_p7 = pneg %p709_p11 }
  0x2a   : > { %s503_s29 = scalar_lea.hbm %s784_s0, 256  ;;  %p504_p10 = scmp.lt.s32.totalorder %s707_s17, %s784_s0 }
  0x2b   : > { %p501_p9 = pnand %p500_p7, %p499_p5  ;;  %p505_p2 = scmp.lt.s32.totalorder %s503_s29, %s498_s26 }
  0x2d   : > { %p502_p12 = pneg %p501_p9  ;;  %p506_p13 = por %p505_p2, %p504_p10 }
  0x2f   : > { %p507_p0 = pnand %p506_p13, %p502_p12 }
  0x31   : > { %510 = shalt.err (!%p507_p0)
}
  0x32   : > { %s511_s8 = scalar_lea.vmem %s160_s22, 128  ;;  %s599_s7 = smov [#allocation2]  }
  0x33   : > { %p512_p1 = scmp.ne.s32.totalorder %s160_s22, %s511_s8  ;;  %s516_s9 = sshll.u32 %s599_s7, 4  ;;  %s517_s9 = int_to_ptr.vmem [resolvable:$false] %s516_s9 }
  0x34   : > { %s518_s10 = scalar_lea.vmem %s517_s9, 256  ;;  %p519_p5 = scmp.lt.s32.totalorder %s160_s22, %s517_s9 }
  0x35   : > { %p514_p6 = pnand %p512_p1, %p500_p7  ;;  %p520_p9 = scmp.lt.s32.totalorder %s518_s10, %s511_s8 }
  0x37   : > { %p515_p3 = pneg %p514_p6  ;;  %p521_p4 = por %p520_p9, %p519_p5 }
  0x39   : > { %p522_p8 = pnand %p521_p4, %p515_p3 }
  0x3b   : > { %525 = shalt.err (!%p522_p8)
}
  0x3c   : > { %420 = dma.hbm_to_vmem [thread:$0]  (!%p709_p11), %s707_s17, 128, %s160_s22, %s149_s25  }
  0x3d   : > { %p799_p12 = scmp.ne.s32.totalorder %s794_s20, 0 }
  0x3e   : > { %s730_s11 = sand.u32 (!%p799_p12), 1, %s586_s13   ;;  %p800_p1 = scmp.ne.s32.totalorder (!%p799_p12), %s792_s18, 0 }
  0x3f   : > { %168 = sbr.rel (%p799_p12) target bundleno = 601 (0x259), region = 32  ;;  %s383_s21 = sshll.u32 (!%p799_p12), %s730_s11, 3 }
  0x40   : > { %s171_s26 = scalar_lea.sflag (!%p799_p12), [#allocation3], %s730_s11  ;;  %s174_s27 = scalar_lea.vmem (!%p799_p12), [#allocation2], %s383_s21 }
  0x44   : > { %569 = dma.done.wait (%p800_p1), %s171_s26, 128  }
  0x45   : > { %571 = vsyncadd (%p800_p1), %s171_s26, 4294967168  ;;  %p801_p4 = scmp.eq.s32.totalorder %s644_s16, 0 }
  0x47   : > { %573 = dma.done.wait (%p801_p4), [#allocation6], 256   ;;  %p802_p6 = pmov %p801_p4 }
  0x48   : > { %v600_v0 = vmov 0.0   ;;  %vm601_vm0 = vmmov 0   ;;  %v466_v1 = vld [vmem:[#allocation5 + $0x8] sm:$0xff]   ;;  %v467_v2 = vld [vmem:[#allocation5] sm:$0xff]   ;;  %v202_v3 = vld [vmem:[%s174_s27] sm:$0xff]  ;;  %vm227_vm1 = vcmask 261120  }
  0x49   : > { %575 = vsyncadd (%p802_p6), [#allocation6], 4294967040  ;;  %397 = vmatprep.subr.bf16.mxu0 %v600_v0  ;;  %401 = vmatprep.mubr.msk.bf16.mxu0 %vm601_vm0, %v600_v0  ;;  %v203_v4 = vpack.c.bf16 %v202_v3, %v202_v3  ;;  %v386_v5 = vld [vmem:[%s786_s2] ss:$0 sm:$0xff]  ;;  %s391_s17 = sshll.u32 %s644_s16, 7  ;;  %s200_s22 = scalar_lea.vmem [#allocation7], %s383_s21 }
  0x4a   : > { %398 = vmatpush3.bf16.msra.mxu0 %v466_v1  ;;  %s296_s23 = sshll.u32 %s200_s22, 4  ;;  %s294_s29 = scalar_lea.hbm %s787_s3, %s391_s17  ;;  %s297_s23 = int_to_ptr.vmem [resolvable:$true] %s296_s23 }
  0x4b   : > { %399 = vmatprep.subr.bf16.mxu0 %v600_v0  ;;  %s283_s30 = scalar_lea.sflag [#allocation4], %s730_s11  ;;  %s526_s4 = scalar_lea.vmem %s297_s23, 128 }
  0x4c   : > { %p527_p8 = scmp.ne.s32.totalorder %s297_s23, %s526_s4  ;;  %p803_p3 = scmp.ne.s32.totalorder %s797_s6, 0 }
  0x4d   : > { %s602_s8 = smov [#allocation7]  }
  0x4e   : > { %400 = vmatpush3.bf16.msra.mxu0 %v467_v2  ;;  %p528_p11 = pnand %p527_p8, %p803_p3  ;;  %s530_s7 = sshll.u32 %s602_s8, 4  ;;  %s531_s7 = int_to_ptr.vmem [resolvable:$false] %s530_s7 }
  0x4f   : > { %s532_s16 = scalar_lea.vmem %s531_s7, 256  ;;  %p533_p10 = scmp.lt.s32.totalorder %s297_s23, %s531_s7 }
  0x50   : > { %p529_p7 = pneg %p528_p11  ;;  %p534_p2 = scmp.lt.s32.totalorder %s532_s16, %s526_s4 }
  0x51   : > { %402 = vmatmul.mubr.msk.bf16.vlgmr.msra.gmra.mxu0 %vm227_vm1, %v203_v4 }
  0x52   : > { %p535_p13 = por %p534_p2, %p533_p10 }
  0x54   : > { %p536_p0 = pnand %p535_p13, %p529_p7 }
 0x111   : > { %v265_v6 = vpop.f32.mrf.mxu0 }
 0x112   : > { %v266_v7 = vadd.f32 %v386_v5, %v265_v6 }
 0x113   : > { %v403_v8 = vpop.f32.mrf.mxu0 }
 0x114   : > { %271 = vmax.xlane.f32.xlu0 %v266_v7 }
 0x115   : > { %v268_v9 = vpop.f32.mrf.mxu0 }
 0x117   : > { %v404_v10 = vpop.f32.mrf.mxu0 }
 0x19d   : > { %v272_v11 = vpop.xlane.xlu0 %271 }
 0x19e   : > { %v273_v12 = vsub.f32 %v266_v7, %v272_v11 }
 0x1a0   : > { %v274_v13 = vmul.f32 1.442695, %v273_v12 }
 0x1a2   : > { %468 = vpow2.f32 %v274_v13 }
 0x1af   : > { %v469_v14 = vpop.eup %468 }
 0x1b0   : > { %276 = vadd.xlane.f32.xlu0 %v469_v14 }
 0x239   : > { %v277_v15 = vpop.xlane.xlu0 %276 }
 0x23a   : > { %470 = vlog2.f32 %v277_v15 }
 0x247   : > { %v471_v16 = vpop.eup %470 }
 0x248   : > { %v279_v17 = vmul.f32 0.6931472, %v471_v16 }
 0x24a   : > { %v280_v18 = vsub.f32 %v273_v12, %v279_v17 }
 0x24c   : > { %281 = vst [vmem:[%s200_s22] sm:$0xff] %v280_v18 }
 0x24d   : > { %539 = shalt.err (!%p536_p0)
}
 0x24e   : > { %s540_s9 = scalar_lea.hbm %s294_s29, 128  ;;  %s544_s21 = scalar_lea.hbm %s787_s3, 256 }
 0x24f   : > { %p541_p5 = scmp.ne.s32.totalorder %s294_s29, %s540_s9  ;;  %p545_p1 = scmp.lt.s32.totalorder %s294_s29, %s787_s3 }
 0x250   : > { %p546_p4 = scmp.lt.s32.totalorder %s544_s21, %s540_s9 }
 0x251   : > { %p542_p9 = pnand %p541_p5, %p803_p3 }
 0x252   : > { %p547_p6 = por %p546_p4, %p545_p1 }
 0x253   : > { %p543_p12 = pneg %p542_p9 }
 0x255   : > { %p548_p8 = pnand %p547_p6, %p543_p12 }
 0x257   : > { %551 = shalt.err (!%p548_p8)
}
 0x258   : > { %411 = dma.vmem_to_hbm [thread:$0]  (%p803_p3), %s297_s23, 128, %s294_s29, %s283_s30  }
 0x259 PF: > { %s308_s18 = sand.u32 1, %s582_s12   ;;  %p804_p11 = scmp.ne.s32.totalorder %s793_s19, 0 }
 0x25a   : > { %p805_p7 = scmp.ge.s32.totalorder %s594_s15, 2  ;;  %s309_s20 = scalar_lea.sflag [#allocation4], %s308_s18 }
 0x25c   : > { %p422_p10 = pnand %p805_p7, %p804_p11 }
 0x25e   : > { %p423_p2 = pneg %p422_p10 }
 0x260   : > { %577 = dma.done.wait (%p423_p2), %s309_s20, 128  }
 0x261   : > { %579 = vsyncadd (%p423_p2), %s309_s20, 4294967168  ;;  %p17_p13 = scmp.ge.s32.totalorder %s677_s24, 4   ;;  %s806_s12 = smov %s586_s13 }
 0x262   : > { %s807_s13 = smov %s590_s14  ;;  %s808_s14 = smov %s694_s5 }
 0x263   : > { %s809_s15 = smov %s677_s24  ;;  %19 = sbr.rel (!%p17_p13) target bundleno = 6 (0x6), region = 81 }
 0x268   :  { %314 = vsyncpa [#allocation3], 1 }
 0x269   :  { %316 = vsyncpa [#allocation3 + $0x1], 1 }
 0x26a   :  { %317 = vsyncpa [#allocation6], 1 }
 0x26b   :  { %318 = vsyncpa [#allocation4], 1 }
 0x26c   :  { %320 = vsyncpa [#allocation4 + $0x1], 1 }

// kernel: tpu_custom_call.1
= control target key start
LH: loop header
LB: loop body
LE: loop exit
PB: predicated region body
PF: predicated region fallthrough
CT: control target
= control target key end

     0   :  { %8 = vsyncpa [#allocation3], 0  ;;  %s784_s0 = inlined_call_operand.hbm [shape: f32[16,32], index: 0, kind: input, shape index: {}]   ;;  %s785_s1 = inlined_call_operand.hbm [shape: bf16[32,128], index: 1, kind: input, shape index: {}]   ;;  %s786_s2 = inlined_call_operand.vmem [shape: f32[1,128], index: 2, kind: input, shape index: {}]   ;;  %s787_s3 = inlined_call_operand.hbm [shape: f32[16,128], index: 3, kind: output, shape index: {}]  }
   0x1   :  { %10 = vsyncpa [#allocation3 + $0x1], 0 }
   0x2   :  { %11 = vsyncpa [#allocation6], 0 }
   0x3   :  { %12 = vsyncpa [#allocation4], 0 }
   0x4   :  { %14 = vsyncpa [#allocation4 + $0x1], 0  ;;  %s623_s12 = smov 0   ;;  %s625_s13 = smov 0  }
   0x5   :  { %s627_s14 = smov 0   ;;  %s629_s15 = smov 0  }
   0x6 LB: > { %s644_s16 = sadd.s32 4294967295, %s594_s15   ;;  %s376_s17 = sadd.s32 4294967294, %s594_s15   ;;  %s594_s15 = sphi %s629_s15, %s809_s15   ;;  %s590_s14 = sphi %s627_s14, %s808_s14   ;;  %s586_s13 = sphi %s625_s13, %s807_s13   ;;  %s582_s12 = sphi %s623_s12, %s806_s12  }
   0x7   : > { %p40_p0 = scmp.ne.s32.totalorder %s586_s13, %s582_s12  ;;  %p788_p1 = scmp.eq.s32.totalorder %s644_s16, 0 }
   0x8   : > { %p112_p3 = scmp.eq.s32.totalorder %s376_s17, 1  ;;  %p377_p5 = scmp.ge.s32.totalorder %s594_s15, 1 }
   0x9   : > { %p653_p4 = por %p788_p1, %p40_p0  ;;  %p119_p7 = scmp.lt.s32.totalorder %s594_s15, 3 }
   0xa   : > { %p658_p6 = por %p112_p3, %p40_p0  ;;  %s596_s21 = smov [#allocation5]  }
   0xb   : > { %s792_s18 = scalar_select %p653_p4, 1, 0 }
   0xc   : > { %s793_s19 = scalar_select %p658_p6, 1, 0 }
   0xd   : > { %p663_p8 = pnand %p377_p5, %p119_p7  ;;  %s131_s22 = sshll.u32 %s596_s21, 4  ;;  %s132_s22 = int_to_ptr.vmem [resolvable:$true] %s131_s22 }
   0xe   : > { %s677_s24 = sadd.s32 1, %s594_s15   ;;  %s27_s25 = sadd.s32 1, %s590_s14 }
   0xf   : > { %s794_s20 = scalar_select %p663_p8, 1, 0 }
  0x10   : > { %p413_p9 = pneg %p663_p8  ;;  %s24_s26 = ssub.s32 %s594_s15, %s677_s24 }
  0x11   : > { %s483_s27 = scalar_lea.vmem %s132_s22, 256  ;;  %p491_p5 = scmp.lt.s32.totalorder %s132_s22, %s132_s22 }
  0x12   : > { %p672_p11 = pnand %p413_p9, %p788_p1  ;;  %p484_p13 = scmp.ne.s32.totalorder %s132_s22, %s483_s27 }
  0x13   : > { %p492_p7 = scmp.lt.s32.totalorder %s483_s27, %s483_s27 }
  0x14   : > { %p474_p12 = pneg %p672_p11 }
  0x15   : > { %p493_p10 = por %p492_p7, %p491_p5 }
  0x16   : > { %p486_p0 = pnand %p484_p13, %p474_p12 }
  0x18   : > { %p487_p3 = pneg %p486_p0 }
  0x1a   : > { %p494_p2 = pnand %p493_p10, %p487_p3 }
  0x1c   : > { %497 = shalt.err (!%p494_p2)
}
  0x1d   : > { %s597_s28 = smov 64   ;;  %s598_s29 = smov 4  }
  0x1e   : > { %416 = dma.hbm_to_vmem [thread:$0]  (!%p672_p11), %s785_s1, 256, %s132_s22, [#allocation6], %s597_s28, %s597_s28, %s598_s29  }
  0x1f   : > { %p25_p9 = scmp.eq.s32.totalorder %s24_s26, 0  ;;  %p34_p12 = scmp.ne.s32.totalorder %s590_s14, %s586_s13 }
  0x20   : > { %p35_p10 = scmp.eq.s32.totalorder %s594_s15, 0  ;;  %p426_p2 = scmp.lt.s32.totalorder %s594_s15, 2 }
  0x21   : > { %s694_s5 = scalar_select %p25_p9, %s590_s14, %s27_s25  }
  0x22   : > { %p36_p13 = por %p35_p10, %p34_p12  ;;  %p796_p0 = scmp.eq.s32.totalorder %s644_s16, 1 }
  0x23   : > { %s148_s7 = sand.u32 1, %s590_s14   ;;  %s381_s8 = sshll.u32 %s594_s15, 7 }
  0x24   : > { %p698_p3 = por %p796_p0, %p34_p12  ;;  %s380_s9 = sshll.u32 %s148_s7, 3 }
  0x25   : > { %s707_s17 = scalar_lea.hbm %s784_s0, %s381_s8  ;;  %s152_s21 = scalar_lea.vmem [#allocation2], %s380_s9 }
  0x26   : > { %s797_s6 = scalar_select %p698_p3, 1, 0 }
  0x27   : > { %s159_s22 = sshll.u32 %s152_s21, 4  ;;  %p709_p11 = pnand %p426_p2, %p36_p13  ;;  %s160_s22 = int_to_ptr.vmem [resolvable:$true] %s159_s22 }
  0x28   : > { %s149_s25 = scalar_lea.sflag [#allocation3], %s148_s7  ;;  %s498_s26 = scalar_lea.hbm %s707_s17, 128 }
  0x29   : > { %p499_p5 = scmp.ne.s32.totalorder %s707_s17, %s498_s26  ;;  %p500_p7 = pneg %p709_p11 }
  0x2a   : > { %s503_s29 = scalar_lea.hbm %s784_s0, 256  ;;  %p504_p10 = scmp.lt.s32.totalorder %s707_s17, %s784_s0 }
  0x2b   : > { %p501_p9 = pnand %p500_p7, %p499_p5  ;;  %p505_p2 = scmp.lt.s32.totalorder %s503_s29, %s498_s26 }
  0x2d   : > { %p502_p12 = pneg %p501_p9  ;;  %p506_p13 = por %p505_p2, %p504_p10 }
  0x2f   : > { %p507_p0 = pnand %p506_p13, %p502_p12 }
  0x31   : > { %510 = shalt.err (!%p507_p0)
}
  0x32   : > { %s511_s8 = scalar_lea.vmem %s160_s22, 128  ;;  %s599_s7 = smov [#allocation2]  }
  0x33   : > { %p512_p1 = scmp.ne.s32.totalorder %s160_s22, %s511_s8  ;;  %s516_s9 = sshll.u32 %s599_s7, 4  ;;  %s517_s9 = int_to_ptr.vmem [resolvable:$false] %s516_s9 }
  0x34   : > { %s518_s10 = scalar_lea.vmem %s517_s9, 256  ;;  %p519_p5 = scmp.lt.s32.totalorder %s160_s22, %s517_s9 }
  0x35   : > { %p514_p6 = pnand %p512_p1, %p500_p7  ;;  %p520_p9 = scmp.lt.s32.totalorder %s518_s10, %s511_s8 }
  0x37   : > { %p515_p3 = pneg %p514_p6  ;;  %p521_p4 = por %p520_p9, %p519_p5 }
  0x39   : > { %p522_p8 = pnand %p521_p4, %p515_p3 }
  0x3b   : > { %525 = shalt.err (!%p522_p8)
}
  0x3c   : > { %420 = dma.hbm_to_vmem [thread:$0]  (!%p709_p11), %s707_s17, 128, %s160_s22, %s149_s25  }
  0x3d   : > { %p799_p12 = scmp.ne.s32.totalorder %s794_s20, 0 }
  0x3e   : > { %s730_s11 = sand.u32 (!%p799_p12), 1, %s586_s13   ;;  %p800_p1 = scmp.ne.s32.totalorder (!%p799_p12), %s792_s18, 0 }
  0x3f   : > { %168 = sbr.rel (%p799_p12) target bundleno = 601 (0x259), region = 32  ;;  %s383_s21 = sshll.u32 (!%p799_p12), %s730_s11, 3 }
  0x40   : > { %s171_s26 = scalar_lea.sflag (!%p799_p12), [#allocation3], %s730_s11  ;;  %s174_s27 = scalar_lea.vmem (!%p799_p12), [#allocation2], %s383_s21 }
  0x44   : > { %569 = dma.done.wait (%p800_p1), %s171_s26, 128  }
  0x45   : > { %571 = vsyncadd (%p800_p1), %s171_s26, 4294967168  ;;  %p801_p4 = scmp.eq.s32.totalorder %s644_s16, 0 }
  0x47   : > { %573 = dma.done.wait (%p801_p4), [#allocation6], 256   ;;  %p802_p6 = pmov %p801_p4 }
  0x48   : > { %v600_v0 = vmov 0.0   ;;  %vm601_vm0 = vmmov 0   ;;  %v466_v1 = vld [vmem:[#allocation5 + $0x8] sm:$0xff]   ;;  %v467_v2 = vld [vmem:[#allocation5] sm:$0xff]   ;;  %v202_v3 = vld [vmem:[%s174_s27] sm:$0xff]  ;;  %vm227_vm1 = vcmask 261120  }
  0x49   : > { %575 = vsyncadd (%p802_p6), [#allocation6], 4294967040  ;;  %397 = vmatprep.subr.bf16.mxu0 %v600_v0  ;;  %401 = vmatprep.mubr.msk.bf16.mxu0 %vm601_vm0, %v600_v0  ;;  %v203_v4 = vpack.c.bf16 %v202_v3, %v202_v3  ;;  %v386_v5 = vld [vmem:[%s786_s2] ss:$0 sm:$0xff]  ;;  %s391_s17 = sshll.u32 %s644_s16, 7  ;;  %s200_s22 = scalar_lea.vmem [#allocation7], %s383_s21 }
  0x4a   : > { %398 = vmatpush3.bf16.msra.mxu0 %v466_v1  ;;  %s296_s23 = sshll.u32 %s200_s22, 4  ;;  %s294_s29 = scalar_lea.hbm %s787_s3, %s391_s17  ;;  %s297_s23 = int_to_ptr.vmem [resolvable:$true] %s296_s23 }
  0x4b   : > { %399 = vmatprep.subr.bf16.mxu0 %v600_v0  ;;  %s283_s30 = scalar_lea.sflag [#allocation4], %s730_s11  ;;  %s526_s4 = scalar_lea.vmem %s297_s23, 128 }
  0x4c   : > { %p527_p8 = scmp.ne.s32.totalorder %s297_s23, %s526_s4  ;;  %p803_p3 = scmp.ne.s32.totalorder %s797_s6, 0 }
  0x4d   : > { %s602_s8 = smov [#allocation7]  }
  0x4e   : > { %400 = vmatpush3.bf16.msra.mxu0 %v467_v2  ;;  %p528_p11 = pnand %p527_p8, %p803_p3  ;;  %s530_s7 = sshll.u32 %s602_s8, 4  ;;  %s531_s7 = int_to_ptr.vmem [resolvable:$false] %s530_s7 }
  0x4f   : > { %s532_s16 = scalar_lea.vmem %s531_s7, 256  ;;  %p533_p10 = scmp.lt.s32.totalorder %s297_s23, %s531_s7 }
  0x50   : > { %p529_p7 = pneg %p528_p11  ;;  %p534_p2 = scmp.lt.s32.totalorder %s532_s16, %s526_s4 }
  0x51   : > { %402 = vmatmul.mubr.msk.bf16.vlgmr.msra.gmra.mxu0 %vm227_vm1, %v203_v4 }
  0x52   : > { %p535_p13 = por %p534_p2, %p533_p10 }
  0x54   : > { %p536_p0 = pnand %p535_p13, %p529_p7 }
 0x111   : > { %v265_v6 = vpop.f32.mrf.mxu0 }
 0x112   : > { %v266_v7 = vadd.f32 %v386_v5, %v265_v6 }
 0x113   : > { %v403_v8 = vpop.f32.mrf.mxu0 }
 0x114   : > { %271 = vmax.xlane.f32.xlu0 %v266_v7 }
 0x115   : > { %v268_v9 = vpop.f32.mrf.mxu0 }
 0x117   : > { %v404_v10 = vpop.f32.mrf.mxu0 }
 0x19d   : > { %v272_v11 = vpop.xlane.xlu0 %271 }
 0x19e   : > { %v273_v12 = vsub.f32 %v266_v7, %v272_v11 }
 0x1a0   : > { %v274_v13 = vmul.f32 1.442695, %v273_v12 }
 0x1a2   : > { %468 = vpow2.f32 %v274_v13 }
 0x1af   : > { %v469_v14 = vpop.eup %468 }
 0x1b0   : > { %276 = vadd.xlane.f32.xlu0 %v469_v14 }
 0x239   : > { %v277_v15 = vpop.xlane.xlu0 %276 }
 0x23a   : > { %470 = vlog2.f32 %v277_v15 }
 0x247   : > { %v471_v16 = vpop.eup %470 }
 0x248   : > { %v279_v17 = vmul.f32 0.6931472, %v471_v16 }
 0x24a   : > { %v280_v18 = vsub.f32 %v273_v12, %v279_v17 }
 0x24c   : > { %281 = vst [vmem:[%s200_s22] sm:$0xff] %v280_v18 }
 0x24d   : > { %539 = shalt.err (!%p536_p0)
}
 0x24e   : > { %s540_s9 = scalar_lea.hbm %s294_s29, 128  ;;  %s544_s21 = scalar_lea.hbm %s787_s3, 256 }
 0x24f   : > { %p541_p5 = scmp.ne.s32.totalorder %s294_s29, %s540_s9  ;;  %p545_p1 = scmp.lt.s32.totalorder %s294_s29, %s787_s3 }
 0x250   : > { %p546_p4 = scmp.lt.s32.totalorder %s544_s21, %s540_s9 }
 0x251   : > { %p542_p9 = pnand %p541_p5, %p803_p3 }
 0x252   : > { %p547_p6 = por %p546_p4, %p545_p1 }
 0x253   : > { %p543_p12 = pneg %p542_p9 }
 0x255   : > { %p548_p8 = pnand %p547_p6, %p543_p12 }
 0x257   : > { %551 = shalt.err (!%p548_p8)
}
 0x258   : > { %411 = dma.vmem_to_hbm [thread:$0]  (%p803_p3), %s297_s23, 128, %s294_s29, %s283_s30  }
 0x259 PF: > { %s308_s18 = sand.u32 1, %s582_s12   ;;  %p804_p11 = scmp.ne.s32.totalorder %s793_s19, 0 }
 0x25a   : > { %p805_p7 = scmp.ge.s32.totalorder %s594_s15, 2  ;;  %s309_s20 = scalar_lea.sflag [#allocation4], %s308_s18 }
 0x25c   : > { %p422_p10 = pnand %p805_p7, %p804_p11 }
 0x25e   : > { %p423_p2 = pneg %p422_p10 }
 0x260   : > { %577 = dma.done.wait (%p423_p2), %s309_s20, 128  }
 0x261   : > { %579 = vsyncadd (%p423_p2), %s309_s20, 4294967168  ;;  %p17_p13 = scmp.ge.s32.totalorder %s677_s24, 4   ;;  %s806_s12 = smov %s586_s13 }
 0x262   : > { %s807_s13 = smov %s590_s14  ;;  %s808_s14 = smov %s694_s5 }
 0x263   : > { %s809_s15 = smov %s677_s24  ;;  %19 = sbr.rel (!%p17_p13) target bundleno = 6 (0x6), region = 81 }
 0x268   :  { %314 = vsyncpa [#allocation3], 1 }
 0x269   :  { %316 = vsyncpa [#allocation3 + $0x1], 1 }
 0x26a   :  { %317 = vsyncpa [#allocation6], 1 }
 0x26b   :  { %318 = vsyncpa [#allocation4], 1 }
 0x26c   :  { %320 = vsyncpa [#allocation4 + $0x1], 1 }

</bundles_post_ra>
